<compile_context>
chip_gen: v5e
topology: v5e:2x2
jax: 0.10.0
libtpu: 0.0.40
codegen_flags: <defaults>
</compile_context>

<pallas_src>
import functools

import jax
import jax.numpy as jnp
from jax.experimental import pallas as pl
from jax.experimental.pallas import tpu as pltpu


# -----------------------------------------------------------------------------
# Pallas kernel: CaseNet classification head
# -----------------------------------------------------------------------------
def casenet_head_kernel(center_ref, w1_ref, b1_ref, w2_ref, b2_ref, nmb_ref,
                        out_ref, case_ref, *, n_cases, topk):
    # center_ref: [8, 128, N]  window-pos x channels(sublanes) x ROIs(lanes, t-major)
    # w1_ref:     [64, 128]    fc1.weight (native layout)
    # b1_ref:     [64, 1]      fc1.bias (column)
    # w2_ref:     [64, 1]      fc2.weight.T (column)
    # b2_ref:     SMEM (1, 1)  fc2.bias
    # nmb_ref:    SMEM (1, 1)  1 - sigmoid(baseline)
    # out_ref:    (1, N)       per-ROI sigmoid output (t-major lanes)
    # case_ref:   (1, B)       noisy-OR casePred

    # MaxPool3d(kernel_size=2) over the 2x2x2 center window: elementwise max
    # of the 8 leading [128, N] slices — no cross-lane/sublane movement.
    cf = center_ref[0]
    for w in range(1, 8):
        cf = jnp.maximum(cf, center_ref[w])                       # [128, N]

    # Dropout(0.5) is the identity at inference time.
    # TODO(synk): no training-mode dropout path in this kernel.

    # fc1 + ReLU                                                   -> [64, N]
    h = jnp.dot(w1_ref[...], cf, preferred_element_type=jnp.float32) + b1_ref[...]
    h = jnp.maximum(h, 0.0)

    # fc2 (+ bias) as broadcast-mul + sublane reduce, then sigmoid -> [1, N]
    logits = jnp.sum(h * w2_ref[...], axis=0, keepdims=True) + b2_ref[0, 0]
    out = jax.nn.sigmoid(logits)
    out_ref[...] = out                          # single lane-dense store

    # casePred = 1 - prod_topk(1 - out) * (1 - sigmoid(baseline))  -> [1, B]
    # Lanes are t-major, so window-t slice t*B:(t+1)*B is a [1, B] row that is
    # case-aligned; the group product is TOPK-1 elementwise vmuls + ONE store.
    one_minus = 1.0 - out
    p = one_minus[:, 0:n_cases]
    for t in range(1, topk):
        p = p * one_minus[:, t * n_cases:(t + 1) * n_cases]
    case_ref[...] = 1.0 - p * nmb_ref[0, 0]


def casenet_head(center_t, w1, b1, w2t, b2, one_minus_base, b, topk):
    """center_t: [8, 128, topk*b] f32 (t-major lanes) -> (out [b, topk], casePred [b])."""
    n = b * topk
    kernel = functools.partial(casenet_head_kernel, n_cases=b, topk=topk)
    out_row, case_row = pl.pallas_call(
        kernel,
        out_shape=(jax.ShapeDtypeStruct((1, n), jnp.float32),
                   jax.ShapeDtypeStruct((1, b), jnp.float32)),
        in_specs=[
            pl.BlockSpec(memory_space=pltpu.MemorySpace.VMEM),   # center_t
            pl.BlockSpec(memory_space=pltpu.MemorySpace.VMEM),   # w1
            pl.BlockSpec(memory_space=pltpu.MemorySpace.VMEM),   # b1
            pl.BlockSpec(memory_space=pltpu.MemorySpace.VMEM),   # w2t
            pl.BlockSpec(memory_space=pltpu.MemorySpace.SMEM),   # b2 (scalar)
            pl.BlockSpec(memory_space=pltpu.MemorySpace.SMEM),   # 1 - sigmoid(baseline)
        ],
        out_specs=(pl.BlockSpec(memory_space=pltpu.MemorySpace.VMEM),
                   pl.BlockSpec(memory_space=pltpu.MemorySpace.VMEM)),
    )(center_t, w1, b1, w2t, b2, one_minus_base)
    out = out_row.reshape(topk, b).T            # t-major row -> [b, topk] (tiny)
    return out, case_row[0]


# -----------------------------------------------------------------------------
# Deterministic NoduleNet stub (plain JAX glue), channel-last (NDHWC) output.
# TODO(synk): the real NoduleNet is an externally injected detector and is not
#             defined in this module; a deterministic stub with the correct
#             output shape semantics is used instead.
# -----------------------------------------------------------------------------
def nodulenet_stub(x, coord, w_feat, w_pred):
    # x: [N, 1, S, S, S], coord: [N, 3, C, C, C], with S = 4 * C
    n = x.shape[0]
    c = coord.shape[-1]
    f = x.shape[-1] // c
    xd = x.reshape(n, 1, c, f, c, f, c, f).mean(axis=(3, 5, 7))      # [N,1,C,C,C]
    feat_in = jnp.concatenate([xd, coord], axis=1)                    # [N,4,C,C,C]
    feat_in_cl = jnp.transpose(feat_in, (0, 2, 3, 4, 1))              # [N,C,C,C,4]
    nodule_feat = jax.nn.relu(
        jnp.einsum('nxyzc,oc->nxyzo', feat_in_cl, w_feat))            # [N,C,C,C,128]
    pred = jnp.einsum('nxyzc,oc->nxyzo', feat_in_cl, w_pred)          # [N,C,C,C,15]
    nodule_pred = pred.reshape(n, c, c, c, 3, 5)
    return nodule_feat, nodule_pred


# -----------------------------------------------------------------------------
# CaseNet forward (glue + Pallas head)
# -----------------------------------------------------------------------------
def casenet_forward(params, xlist, coordlist):
    b, topk = xlist.shape[0], xlist.shape[1]
    x = xlist.reshape((-1,) + xlist.shape[2:])
    coord = coordlist.reshape((-1,) + coordlist.shape[2:])

    nodule_feat, nodule_pred = nodulenet_stub(
        x, coord, params['w_feat'], params['w_pred'])
    nodule_pred = nodule_pred.reshape(b, topk, -1)

    # Center 2x2x2 window of channel-last noduleFeat -> [8, 128, topk*b]
    # (window position, channels on sublanes, ROIs on lanes t-major).
    n, d1, d2, d3, ch = nodule_feat.shape
    c1, c2, c3 = d1 // 2, d2 // 2, d3 // 2
    center = nodule_feat[:, c1 - 1:c1 + 1, c2 - 1:c2 + 1, c3 - 1:c3 + 1, :]
    center = center.reshape(b, topk, 8, ch)
    center_t = jnp.transpose(center, (2, 3, 1, 0)).reshape(8, ch, topk * b)

    one_minus_base = 1.0 - jax.nn.sigmoid(params['baseline'])         # [1,1]

    out, case_pred = casenet_head(
        center_t, params['w1'], params['b1'], params['w2t'], params['b2'],
        one_minus_base, b, topk)
    return nodule_pred, case_pred, out


# -----------------------------------------------------------------------------
# Pure-JAX reference for the head (used for the correctness check below).
# -----------------------------------------------------------------------------
def head_reference(cf, w1, b1, w2t, b2, baseline, b, topk):
    h = jax.nn.relu(cf @ w1.T + b1[:, 0])                 # [N, 64]
    out = jax.nn.sigmoid(h @ w2t + b2[0, 0])[:, 0]        # [N]
    out = out.reshape(b, topk)
    base_prob = jax.nn.sigmoid(baseline[0, 0])
    case = 1.0 - jnp.prod(1.0 - out, axis=1) * (1.0 - base_prob)
    return out, case


def init_params(key):
    ks = jax.random.split(key, 6)
    return {
        # fc1: Linear(128, 64) -> weight [64, 128], bias as column [64, 1]
        'w1': jax.random.normal(ks[0], (64, 128), jnp.float32) * 0.05,
        'b1': jax.random.normal(ks[1], (64, 1), jnp.float32) * 0.05,
        # fc2: Linear(64, 1) -> weight.T as column [64, 1], bias [1, 1]
        'w2t': jax.random.normal(ks[2], (64, 1), jnp.float32) * 0.05,
        'b2': jax.random.normal(ks[3], (1, 1), jnp.float32) * 0.05,
        # baseline = -30.0
        'baseline': jnp.full((1, 1), -30.0, jnp.float32),
        # NoduleNet stub weights
        'w_feat': jax.random.normal(ks[4], (128, 4), jnp.float32) * 0.5,
        'w_pred': jax.random.normal(ks[5], (15, 4), jnp.float32) * 0.5,
    }


if __name__ == "__main__":
    key = jax.random.PRNGKey(0)
    kp, kx, kc = jax.random.split(key, 3)
    params = init_params(kp)

    B, TOPK, S, C = 2, 3, 16, 4   # small analogue of (b, topk, 96, 24)
    xlist = jax.random.normal(kx, (B, TOPK, 1, S, S, S), jnp.float32)
    coordlist = jax.random.normal(kc, (B, TOPK, 3, C, C, C), jnp.float32)

    forward = jax.jit(casenet_forward)
    nodule_pred, case_pred, out = jax.block_until_ready(
        forward(params, xlist, coordlist))

    # Pure-JAX reference check for the Pallas head.
    x = xlist.reshape((-1,) + xlist.shape[2:])
    coord = coordlist.reshape((-1,) + coordlist.shape[2:])
    feat, _ = nodulenet_stub(x, coord, params['w_feat'], params['w_pred'])
    n_, d1, d2, d3, ch = feat.shape
    c1, c2, c3 = d1 // 2, d2 // 2, d3 // 2
    center_win = feat[:, c1 - 1:c1 + 1, c2 - 1:c2 + 1, c3 - 1:c3 + 1, :]
    cf = jnp.max(center_win.reshape(n_, 8, ch), axis=1)
    out_ref, case_ref = head_reference(
        cf, params['w1'], params['b1'], params['w2t'], params['b2'],
        params['baseline'], B, TOPK)

    assert nodule_pred.shape == (B, TOPK, C * C * C * 3 * 5)
    assert out.shape == (B, TOPK) and case_pred.shape == (B,)
    assert jnp.allclose(out, out_ref, atol=1e-5, rtol=1e-5)
    assert jnp.allclose(case_pred, case_ref, atol=1e-5, rtol=1e-5)
    print("KERNEL_OK")
</pallas_src>

<mosaic_0001>
module attributes {stable_mosaic.version = 11 : i64} {
  func.func @casenet_head_kernel(%arg0: memref<8x128x6xf32, #tpu.memory_space<vmem>>, %arg1: memref<64x128xf32, #tpu.memory_space<vmem>>, %arg2: memref<64x1xf32, #tpu.memory_space<vmem>>, %arg3: memref<64x1xf32, #tpu.memory_space<vmem>>, %arg4: memref<1x1xf32, #tpu.memory_space<smem>>, %arg5: memref<1x1xf32, #tpu.memory_space<smem>>, %arg6: memref<1x6xf32, #tpu.memory_space<vmem>>, %arg7: memref<1x2xf32, #tpu.memory_space<vmem>>) attributes {dimension_semantics = [], scalar_prefetch = 0 : i64, scratch_operands = 0 : i64, tpu.core_type = #tpu.core_type<tc>} {
    %c0 = arith.constant 0 : index
    %c0_0 = arith.constant 0 : index
    %c0_1 = arith.constant 0 : index
    %0 = vector.load %arg0[%c0, %c0_0, %c0_1] : memref<8x128x6xf32, #tpu.memory_space<vmem>>, vector<1x128x6xf32>
    %1 = vector.shape_cast %0 : vector<1x128x6xf32> to vector<128x6xf32>
    %c1 = arith.constant 1 : index
    %c0_2 = arith.constant 0 : index
    %c0_3 = arith.constant 0 : index
    %2 = vector.load %arg0[%c1, %c0_2, %c0_3] : memref<8x128x6xf32, #tpu.memory_space<vmem>>, vector<1x128x6xf32>
    %3 = vector.shape_cast %2 : vector<1x128x6xf32> to vector<128x6xf32>
    %4 = arith.maximumf %1, %3 : vector<128x6xf32>
    %c2 = arith.constant 2 : index
    %c0_4 = arith.constant 0 : index
    %c0_5 = arith.constant 0 : index
    %5 = vector.load %arg0[%c2, %c0_4, %c0_5] : memref<8x128x6xf32, #tpu.memory_space<vmem>>, vector<1x128x6xf32>
    %6 = vector.shape_cast %5 : vector<1x128x6xf32> to vector<128x6xf32>
    %7 = arith.maximumf %4, %6 : vector<128x6xf32>
    %c3 = arith.constant 3 : index
    %c0_6 = arith.constant 0 : index
    %c0_7 = arith.constant 0 : index
    %8 = vector.load %arg0[%c3, %c0_6, %c0_7] : memref<8x128x6xf32, #tpu.memory_space<vmem>>, vector<1x128x6xf32>
    %9 = vector.shape_cast %8 : vector<1x128x6xf32> to vector<128x6xf32>
    %10 = arith.maximumf %7, %9 : vector<128x6xf32>
    %c4 = arith.constant 4 : index
    %c0_8 = arith.constant 0 : index
    %c0_9 = arith.constant 0 : index
    %11 = vector.load %arg0[%c4, %c0_8, %c0_9] : memref<8x128x6xf32, #tpu.memory_space<vmem>>, vector<1x128x6xf32>
    %12 = vector.shape_cast %11 : vector<1x128x6xf32> to vector<128x6xf32>
    %13 = arith.maximumf %10, %12 : vector<128x6xf32>
    %c5 = arith.constant 5 : index
    %c0_10 = arith.constant 0 : index
    %c0_11 = arith.constant 0 : index
    %14 = vector.load %arg0[%c5, %c0_10, %c0_11] : memref<8x128x6xf32, #tpu.memory_space<vmem>>, vector<1x128x6xf32>
    %15 = vector.shape_cast %14 : vector<1x128x6xf32> to vector<128x6xf32>
    %16 = arith.maximumf %13, %15 : vector<128x6xf32>
    %c6 = arith.constant 6 : index
    %c0_12 = arith.constant 0 : index
    %c0_13 = arith.constant 0 : index
    %17 = vector.load %arg0[%c6, %c0_12, %c0_13] : memref<8x128x6xf32, #tpu.memory_space<vmem>>, vector<1x128x6xf32>
    %18 = vector.shape_cast %17 : vector<1x128x6xf32> to vector<128x6xf32>
    %19 = arith.maximumf %16, %18 : vector<128x6xf32>
    %c7 = arith.constant 7 : index
    %c0_14 = arith.constant 0 : index
    %c0_15 = arith.constant 0 : index
    %20 = vector.load %arg0[%c7, %c0_14, %c0_15] : memref<8x128x6xf32, #tpu.memory_space<vmem>>, vector<1x128x6xf32>
    %21 = vector.shape_cast %20 : vector<1x128x6xf32> to vector<128x6xf32>
    %22 = arith.maximumf %19, %21 : vector<128x6xf32>
    %c0_16 = arith.constant 0 : index
    %c0_17 = arith.constant 0 : index
    %23 = vector.load %arg1[%c0_16, %c0_17] : memref<64x128xf32, #tpu.memory_space<vmem>>, vector<64x128xf32>
    %cst = arith.constant dense<0.000000e+00> : vector<64x6xf32>
    %24 = tpu.matmul %23, %22, %cst {dimension_numbers = #tpu.dot_dimension_numbers<[1], [0], [0], [1], [0, 0, 1, 1], [], []>} : vector<64x128xf32>, vector<128x6xf32>, vector<64x6xf32> -> vector<64x6xf32>
    %c0_18 = arith.constant 0 : index
    %c0_19 = arith.constant 0 : index
    %25 = vector.load %arg2[%c0_18, %c0_19] : memref<64x1xf32, #tpu.memory_space<vmem>>, vector<64x1xf32>
    %26 = vector.broadcast %25 : vector<64x1xf32> to vector<64x6xf32>
    %27 = arith.addf %24, %26 : vector<64x6xf32>
    %cst_20 = arith.constant 0.000000e+00 : f32
    %28 = vector.broadcast %cst_20 : f32 to vector<64x6xf32>
    %29 = arith.maximumf %27, %28 : vector<64x6xf32>
    %c0_21 = arith.constant 0 : index
    %c0_22 = arith.constant 0 : index
    %30 = vector.load %arg3[%c0_21, %c0_22] : memref<64x1xf32, #tpu.memory_space<vmem>>, vector<64x1xf32>
    %31 = vector.broadcast %30 : vector<64x1xf32> to vector<64x6xf32>
    %32 = arith.mulf %29, %31 : vector<64x6xf32>
    %cst_23 = arith.constant dense<0.000000e+00> : vector<6xf32>
    %33 = vector.multi_reduction <add>, %32, %cst_23 [0] : vector<64x6xf32> to vector<6xf32>
    %34 = vector.shape_cast %33 : vector<6xf32> to vector<1x6xf32>
    %c0_24 = arith.constant 0 : index
    %c0_25 = arith.constant 0 : index
    %35 = memref.load %arg4[%c0_24, %c0_25] : memref<1x1xf32, #tpu.memory_space<smem>>
    %36 = vector.broadcast %35 : f32 to vector<1x6xf32>
    %37 = arith.addf %34, %36 : vector<1x6xf32>
    %38 = arith.negf %37 : vector<1x6xf32>
    %39 = math.exp %38 : vector<1x6xf32>
    %cst_26 = arith.constant 1.000000e+00 : f32
    %40 = vector.broadcast %cst_26 : f32 to vector<1x6xf32>
    %41 = arith.addf %40, %39 : vector<1x6xf32>
    %42 = arith.divf %40, %41 : vector<1x6xf32>
    %c0_27 = arith.constant 0 : index
    %c0_28 = arith.constant 0 : index
    %43 = vector.load %arg6[%c0_27, %c0_28] : memref<1x6xf32, #tpu.memory_space<vmem>>, vector<1x6xf32>
    tpu.vector_store %arg6[%c0_27, %c0_28], %42 {strides = array<i32>} : memref<1x6xf32, #tpu.memory_space<vmem>>, vector<1x6xf32>,
    %cst_29 = arith.constant 1.000000e+00 : f32
    %44 = vector.broadcast %cst_29 : f32 to vector<1x6xf32>
    %45 = arith.subf %44, %42 : vector<1x6xf32>
    %46 = vector.extract_strided_slice %45 {offsets = [0, 0], sizes = [1, 2], strides = [1, 1]} : vector<1x6xf32> to vector<1x2xf32>
    %47 = vector.extract_strided_slice %45 {offsets = [0, 2], sizes = [1, 2], strides = [1, 1]} : vector<1x6xf32> to vector<1x2xf32>
    %48 = arith.mulf %46, %47 : vector<1x2xf32>
    %49 = vector.extract_strided_slice %45 {offsets = [0, 4], sizes = [1, 2], strides = [1, 1]} : vector<1x6xf32> to vector<1x2xf32>
    %50 = arith.mulf %48, %49 : vector<1x2xf32>
    %c0_30 = arith.constant 0 : index
    %c0_31 = arith.constant 0 : index
    %51 = memref.load %arg5[%c0_30, %c0_31] : memref<1x1xf32, #tpu.memory_space<smem>>
    %52 = vector.broadcast %51 : f32 to vector<1x2xf32>
    %53 = arith.mulf %50, %52 : vector<1x2xf32>
    %cst_32 = arith.constant 1.000000e+00 : f32
    %54 = vector.broadcast %cst_32 : f32 to vector<1x2xf32>
    %55 = arith.subf %54, %53 : vector<1x2xf32>
    %c0_33 = arith.constant 0 : index
    %c0_34 = arith.constant 0 : index
    %56 = vector.load %arg7[%c0_33, %c0_34] : memref<1x2xf32, #tpu.memory_space<vmem>>, vector<1x2xf32>
    tpu.vector_store %arg7[%c0_33, %c0_34], %55 {strides = array<i32>} : memref<1x2xf32, #tpu.memory_space<vmem>>, vector<1x2xf32>,
    return
  }
}

</mosaic_0001>

<bundles_post_ra>
// kernel: casenet_forward.1
= control target key start
LH: loop header
LB: loop body
LE: loop exit
PB: predicated region body
PF: predicated region fallthrough
CT: control target
= control target key end

     0   :  { %v716_v2 = vmov 0   ;;  %s1236_s0 = inlined_call_operand.vmem [shape: f32[8,128,6], index: 0, kind: input, shape index: {}]   ;;  %s1237_s1 = inlined_call_operand.vmem [shape: f32[64,128], index: 1, kind: input, shape index: {}]   ;;  %s1238_s2 = inlined_call_operand.vmem [shape: f32[64,1], index: 2, kind: input, shape index: {}]   ;;  %s1239_s3 = inlined_call_operand.vmem [shape: f32[64,1], index: 3, kind: input, shape index: {}]   ;;  %s1240_s4 = inlined_call_operand.<no memory space> [shape: f32[1,1], index: 4, kind: input, shape index: {}]   ;;  %s1241_s5 = inlined_call_operand.<no memory space> [shape: f32[1,1], index: 5, kind: input, shape index: {}]   ;;  %s1242_s6 = inlined_call_operand.vmem [shape: f32[1,6], index: 6, kind: output, shape index: {0}]   ;;  %s1243_s7 = inlined_call_operand.hbm [shape: f32[1,2], index: 7, kind: output, shape index: {1}]  }
   0x1   :  { %v283_v0 = vld [vmem:[%s1238_s2] sm:$0xff]  ;;  %v285_v1 = vld [vmem:[%s1238_s2 + $0x10] sm:$0xff]  ;;  %683 = vset.pattern.permute.xlu0 %v716_v2  ;;  %684 = vset.pattern.permute.xlu1 %v716_v2  ;;  %v43_v3 = vld [vmem:[%s1236_s0 + $0x78] sm:$0xff] }
   0x2   :  { %v533_v4 = vld [vmem:[%s1236_s0 + $0xf8] sm:$0xff]  ;;  %293 = vperm.xlu0 %683, %v283_v0   ;;  %303 = vperm.xlu1 %684, %v285_v1   ;;  %v42_v8 = vld [vmem:[%s1236_s0 + $0x70] sm:$0xff]  ;;  %v284_v14 = vld [vmem:[%s1238_s2 + $0x8] sm:$0xff] }
   0x3   :  { %v549_v5 = vld [vmem:[%s1236_s0 + $0x178] sm:$0xff]  ;;  %v76_v6 = vmax.f32 %v43_v3, %v533_v4  ;;  %685 = vset.pattern.permute.xlu2 %v716_v2  ;;  %v532_v10 = vld [vmem:[%s1236_s0 + $0xf0] sm:$0xff]  ;;  %v41_v17 = vld [vmem:[%s1236_s0 + $0x68] sm:$0xff] }
   0x4   :  { %v565_v7 = vld [vmem:[%s1236_s0 + $0x1f8] sm:$0xff]  ;;  %v548_v11 = vld [vmem:[%s1236_s0 + $0x170] sm:$0xff]  ;;  %v75_v13 = vmax.f32 %v42_v8, %v532_v10  ;;  %v531_v20 = vld [vmem:[%s1236_s0 + $0xe8] sm:$0xff] }
   0x5   :  { %v109_v9 = vmax.f32 %v76_v6, %v549_v5  ;;  %v581_v12 = vld [vmem:[%s1236_s0 + $0x278] sm:$0xff]  ;;  %v564_v16 = vld [vmem:[%s1236_s0 + $0x1f0] sm:$0xff]  ;;  %v547_v21 = vld [vmem:[%s1236_s0 + $0x168] sm:$0xff]  ;;  %v74_v25 = vmax.f32 %v41_v17, %v531_v20 }
   0x6   :  { %v597_v18 = vld [vmem:[%s1236_s0 + $0x2f8] sm:$0xff]  ;;  %v108_v19 = vmax.f32 %v75_v13, %v548_v11  ;;  %v580_v24 = vld [vmem:[%s1236_s0 + $0x270] sm:$0xff]  ;;  %v563_v27 = vld [vmem:[%s1236_s0 + $0x1e8] sm:$0xff] }
   0x7   :  { %v142_v15 = vmax.f32 %v109_v9, %v565_v7  ;;  %v613_v23 = vld [vmem:[%s1236_s0 + $0x378] sm:$0xff]  ;;  %v40_v29 = vld [vmem:[%s1236_s0 + $0x60] sm:$0xff]  ;;  %v596_v31 = vld [vmem:[%s1236_s0 + $0x2f0] sm:$0xff]  ;;  %v107_v32 = vmax.f32 %v74_v25, %v547_v21 }
   0x8   :  { %v141_v26 = vmax.f32 %v108_v19, %v564_v16  ;;  %v286_v28 = vld [vmem:[%s1238_s2 + $0x18] sm:$0xff]  ;;  %v530_v33 = vld [vmem:[%s1236_s0 + $0xe0] sm:$0xff]  ;;  %v612_v37 = vld [vmem:[%s1236_s0 + $0x370] sm:$0xff] }
   0x9   :  { %v175_v22 = vmax.f32 %v142_v15, %v581_v12  ;;  %v546_v34 = vld [vmem:[%s1236_s0 + $0x160] sm:$0xff]  ;;  %v629_v35 = vld [vmem:[%s1236_s0 + $0x3f8] sm:$0xff]  ;;  %v579_v38 = vld [vmem:[%s1236_s0 + $0x268] sm:$0xff]  ;;  %v73_v39 = vmax.f32 %v40_v29, %v530_v33  ;;  %v140_v42 = vmax.f32 %v107_v32, %v563_v27 }
   0xa   :  { %298 = vperm.xlu0 %683, %v284_v14   ;;  %308 = vperm.xlu1 %684, %v286_v28   ;;  %v174_v36 = vmax.f32 %v141_v26, %v580_v24  ;;  %v628_v41 = vld [vmem:[%s1236_s0 + $0x3f0] sm:$0xff]  ;;  %v562_v43 = vld [vmem:[%s1236_s0 + $0x1e0] sm:$0xff]  ;;  %v39_v44 = vld [vmem:[%s1236_s0 + $0x58] sm:$0xff] }
   0xb   :  { %v208_v30 = vmax.f32 %v175_v22, %v597_v18  ;;  %v529_v45 = vld [vmem:[%s1236_s0 + $0xd8] sm:$0xff]  ;;  %v287_v47 = vld [vmem:[%s1238_s2 + $0x20] sm:$0xff]  ;;  %v595_v48 = vld [vmem:[%s1236_s0 + $0x2e8] sm:$0xff]  ;;  %v106_v49 = vmax.f32 %v73_v39, %v546_v34  ;;  %v173_v53 = vmax.f32 %v140_v42, %v579_v38 }
   0xc   :  { %v207_v46 = vmax.f32 %v174_v36, %v596_v31  ;;  %v72_v50 = vmax.f32 %v39_v44, %v529_v45  ;;  %v545_v51 = vld [vmem:[%s1236_s0 + $0x158] sm:$0xff]  ;;  %v611_v54 = vld [vmem:[%s1236_s0 + $0x368] sm:$0xff]  ;;  %v578_v55 = vld [vmem:[%s1236_s0 + $0x260] sm:$0xff] }
   0xd   :  { %v241_v40 = vmax.f32 %v208_v30, %v613_v23  ;;  %v561_v56 = vld [vmem:[%s1236_s0 + $0x1d8] sm:$0xff]  ;;  %v139_v58 = vmax.f32 %v106_v49, %v562_v43  ;;  %v38_v60 = vld [vmem:[%s1236_s0 + $0x50] sm:$0xff]  ;;  %v206_v63 = vmax.f32 %v173_v53, %v595_v48  ;;  %v627_v0 = vld [vmem:[%s1236_s0 + $0x3e8] sm:$0xff] }
   0xe   :  { %v240_v57 = vmax.f32 %v207_v46, %v612_v37  ;;  %v105_v59 = vmax.f32 %v72_v50, %v545_v51  ;;  %v528_v61 = vld [vmem:[%s1236_s0 + $0xd0] sm:$0xff]  ;;  %v594_v1 = vld [vmem:[%s1236_s0 + $0x2e0] sm:$0xff]  ;;  %v577_v2 = vld [vmem:[%s1236_s0 + $0x258] sm:$0xff] }
   0xf   :  { %v274_v52 = vmax.f32 %v241_v40, %v629_v35  ;;  %v544_v62 = vld [vmem:[%s1236_s0 + $0x150] sm:$0xff]  ;;  %v71_v3 = vmax.f32 %v38_v60, %v528_v61  ;;  %v172_v5 = vmax.f32 %v139_v58, %v578_v55  ;;  %v610_v6 = vld [vmem:[%s1236_s0 + $0x360] sm:$0xff]  ;;  %v593_v8 = vld [vmem:[%s1236_s0 + $0x2d8] sm:$0xff]  ;;  %v239_v10 = vmax.f32 %v206_v63, %v611_v54 }
  0x10   :  { %v273_v4 = vmax.f32 %v240_v57, %v628_v41  ;;  %v138_v7 = vmax.f32 %v105_v59, %v561_v56  ;;  %v560_v9 = vld [vmem:[%s1236_s0 + $0x1d0] sm:$0xff]  ;;  %v37_v12 = vld [vmem:[%s1236_s0 + $0x48] sm:$0xff]  ;;  %v626_v16 = vld [vmem:[%s1236_s0 + $0x3e0] sm:$0xff] }
  0x11   :  { %331 = vmatpush.msra.mxu0 %v274_v52  ;;  %631 = vmatpush.msra.mxu1 %v274_v52  ;;  %v104_v11 = vmax.f32 %v71_v3, %v544_v62  ;;  %v527_v13 = vld [vmem:[%s1236_s0 + $0xc8] sm:$0xff]  ;;  %v205_v15 = vmax.f32 %v172_v5, %v594_v1  ;;  %v609_v18 = vld [vmem:[%s1236_s0 + $0x358] sm:$0xff]  ;;  %v576_v19 = vld [vmem:[%s1236_s0 + $0x250] sm:$0xff]  ;;  %v272_v21 = vmax.f32 %v239_v10, %v627_v0 }
  0x12   :  { %632 = vmatpush.msra.mxu2 %v274_v52  ;;  %633 = vmatpush.msra.mxu3 %v274_v52  ;;  %v543_v14 = vld [vmem:[%s1236_s0 + $0x148] sm:$0xff]  ;;  %v171_v17 = vmax.f32 %v138_v7, %v577_v2  ;;  %v70_v20 = vmax.f32 %v37_v12, %v527_v13  ;;  %v592_v23 = vld [vmem:[%s1236_s0 + $0x2d0] sm:$0xff]  ;;  %v36_v29 = vld [vmem:[%s1236_s0 + $0x40] sm:$0xff] }
  0x13   :  { %313 = vperm.xlu0 %683, %v287_v47   ;;  %332 = vmatpush.msra.mxu0 %v273_v4  ;;  %v137_v22 = vmax.f32 %v104_v11, %v560_v9  ;;  %v559_v24 = vld [vmem:[%s1236_s0 + $0x1c8] sm:$0xff]  ;;  %v382_v25 = vld [vmem:[%s1239_s3 + $0x10] sm:$0xff]  ;;  %v238_v26 = vmax.f32 %v205_v15, %v610_v6  ;;  %v526_v30 = vld [vmem:[%s1236_s0 + $0xc0] sm:$0xff] }
  0x14   :  { %634 = vmatpush.msra.mxu1 %v273_v4  ;;  %635 = vmatpush.msra.mxu2 %v273_v4  ;;  %v204_v27 = vmax.f32 %v171_v17, %v593_v8  ;;  %v103_v28 = vmax.f32 %v70_v20, %v543_v14  ;;  %v542_v31 = vld [vmem:[%s1236_s0 + $0x140] sm:$0xff]  ;;  %v625_v32 = vld [vmem:[%s1236_s0 + $0x3d8] sm:$0xff]  ;;  %v608_v34 = vld [vmem:[%s1236_s0 + $0x350] sm:$0xff]  ;;  %v69_v36 = vmax.f32 %v36_v29, %v526_v30 }
  0x15   :  { %636 = vmatpush.msra.mxu3 %v273_v4  ;;  %400 = vperm.xlu1 %684, %v382_v25   ;;  %v170_v33 = vmax.f32 %v137_v22, %v576_v19  ;;  %v575_v35 = vld [vmem:[%s1236_s0 + $0x248] sm:$0xff]  ;;  %v271_v37 = vmax.f32 %v238_v26, %v626_v16  ;;  %v624_v39 = vld [vmem:[%s1236_s0 + $0x3d0] sm:$0xff]  ;;  %v558_v41 = vld [vmem:[%s1236_s0 + $0x1c0] sm:$0xff] }
  0x16   :  { %333 = vmatpush.msra.mxu0 %v272_v21  ;;  %637 = vmatpush.msra.mxu1 %v272_v21  ;;  %v237_v38 = vmax.f32 %v204_v27, %v609_v18  ;;  %v136_v40 = vmax.f32 %v103_v28, %v559_v24  ;;  %v35_v42 = vld [vmem:[%s1236_s0 + $0x38] sm:$0xff]  ;;  %v591_v44 = vld [vmem:[%s1236_s0 + $0x2c8] sm:$0xff]  ;;  %v102_v45 = vmax.f32 %v69_v36, %v542_v31  ;;  %v574_v52 = vld [vmem:[%s1236_s0 + $0x240] sm:$0xff] }
  0x17   :  { %638 = vmatpush.msra.mxu2 %v272_v21  ;;  %639 = vmatpush.msra.mxu3 %v272_v21  ;;  %v203_v43 = vmax.f32 %v170_v33, %v592_v23  ;;  %v525_v46 = vld [vmem:[%s1236_s0 + $0xb8] sm:$0xff]  ;;  %v607_v51 = vld [vmem:[%s1236_s0 + $0x348] sm:$0xff]  ;;  %v34_v57 = vld [vmem:[%s1236_s0 + $0x30] sm:$0xff] }
  0x18   :  { %v541_v47 = vld [vmem:[%s1236_s0 + $0x138] sm:$0xff]  ;;  %334 = vmatpush.msra.mxu0 %v271_v37  ;;  %640 = vmatpush.msra.mxu1 %v271_v37  ;;  %v270_v48 = vmax.f32 %v237_v38, %v625_v32  ;;  %v169_v50 = vmax.f32 %v136_v40, %v575_v35  ;;  %v68_v53 = vmax.f32 %v35_v42, %v525_v46  ;;  %v524_v58 = vld [vmem:[%s1236_s0 + $0xb0] sm:$0xff]  ;;  %v623_v60 = vld [vmem:[%s1236_s0 + $0x3c8] sm:$0xff] }
  0x19   :  { %v383_v49 = vld [vmem:[%s1239_s3 + $0x18] sm:$0xff]  ;;  %641 = vmatpush.msra.mxu2 %v271_v37  ;;  %642 = vmatpush.msra.mxu3 %v271_v37  ;;  %v236_v54 = vmax.f32 %v203_v43, %v608_v34  ;;  %v135_v55 = vmax.f32 %v102_v45, %v558_v41  ;;  %v590_v61 = vld [vmem:[%s1236_s0 + $0x2c0] sm:$0xff]  ;;  %v67_v63 = vmax.f32 %v34_v57, %v524_v58  ;;  %v540_v0 = vld [vmem:[%s1236_s0 + $0x130] sm:$0xff] }
  0x1a   :  { %v557_v56 = vld [vmem:[%s1236_s0 + $0x1b8] sm:$0xff]  ;;  %335 = vmatpush.msra.mxu0 %v270_v48  ;;  %643 = vmatpush.msra.mxu1 %v270_v48  ;;  %v202_v59 = vmax.f32 %v169_v50, %v591_v44  ;;  %v101_v62 = vmax.f32 %v68_v53, %v541_v47  ;;  %v606_v3 = vld [vmem:[%s1236_s0 + $0x340] sm:$0xff]  ;;  %v556_v5 = vld [vmem:[%s1236_s0 + $0x1b0] sm:$0xff] }
  0x1b   :  { %644 = vmatpush.msra.mxu2 %v270_v48  ;;  %645 = vmatpush.msra.mxu3 %v270_v48  ;;  %v269_v1 = vmax.f32 %v236_v54, %v624_v39  ;;  %v168_v2 = vmax.f32 %v135_v55, %v574_v52  ;;  %v573_v4 = vld [vmem:[%s1236_s0 + $0x238] sm:$0xff]  ;;  %v622_v7 = vld [vmem:[%s1236_s0 + $0x3c0] sm:$0xff]  ;;  %v100_v9 = vmax.f32 %v67_v63, %v540_v0  ;;  %v33_v10 = vld [vmem:[%s1236_s0 + $0x28] sm:$0xff] }
  0x1c   :  { %405 = vperm.xlu0 %683, %v383_v49   ;;  %v235_v6 = vmax.f32 %v202_v59, %v607_v51  ;;  %v134_v8 = vmax.f32 %v101_v62, %v557_v56  ;;  %v523_v11 = vld [vmem:[%s1236_s0 + $0xa8] sm:$0xff]  ;;  %v589_v13 = vld [vmem:[%s1236_s0 + $0x2b8] sm:$0xff]  ;;  %v572_v14 = vld [vmem:[%s1236_s0 + $0x230] sm:$0xff] }
  0x1d   :  { %336 = vmatpush.msra.mxu0 %v269_v1  ;;  %646 = vmatpush.msra.mxu1 %v269_v1  ;;  %v201_v12 = vmax.f32 %v168_v2, %v590_v61  ;;  %v66_v15 = vmax.f32 %v33_v10, %v523_v11  ;;  %v539_v16 = vld [vmem:[%s1236_s0 + $0x128] sm:$0xff]  ;;  %v605_v19 = vld [vmem:[%s1236_s0 + $0x338] sm:$0xff]  ;;  %v133_v20 = vmax.f32 %v100_v9, %v556_v5  ;;  %v588_v21 = vld [vmem:[%s1236_s0 + $0x2b0] sm:$0xff] }
  0x1e   :  { %647 = vmatpush.msra.mxu2 %v269_v1  ;;  %648 = vmatpush.msra.mxu3 %v269_v1  ;;  %v268_v17 = vmax.f32 %v235_v6, %v623_v60  ;;  %v167_v18 = vmax.f32 %v134_v8, %v573_v4  ;;  %v555_v22 = vld [vmem:[%s1236_s0 + $0x1a8] sm:$0xff]  ;;  %v621_v24 = vld [vmem:[%s1236_s0 + $0x3b8] sm:$0xff]  ;;  %v289_v26 = vld [vmem:[%s1238_s2 + $0x30] sm:$0xff] }
  0x1f   :  { %v234_v23 = vmax.f32 %v201_v12, %v606_v3  ;;  %v99_v25 = vmax.f32 %v66_v15, %v539_v16  ;;  %v32_v27 = vld [vmem:[%s1236_s0 + $0x20] sm:$0xff]  ;;  %v166_v30 = vmax.f32 %v133_v20, %v572_v14  ;;  %v604_v31 = vld [vmem:[%s1236_s0 + $0x330] sm:$0xff]  ;;  %v571_v32 = vld [vmem:[%s1236_s0 + $0x228] sm:$0xff]  ;;  %323 = vperm.xlu1 %684, %v289_v26  }
  0x20   :  { %v522_v28 = vld [vmem:[%s1236_s0 + $0xa0] sm:$0xff]  ;;  %337 = vmatpush.msra.mxu0 %v268_v17  ;;  %649 = vmatpush.msra.mxu1 %v268_v17  ;;  %v200_v29 = vmax.f32 %v167_v18, %v589_v13  ;;  %v290_v36 = vld [vmem:[%s1238_s2 + $0x38] sm:$0xff]  ;;  %v587_v38 = vld [vmem:[%s1236_s0 + $0x2a8] sm:$0xff] }
  0x21   :  { %v65_v33 = vmax.f32 %v32_v27, %v522_v28  ;;  %v538_v34 = vld [vmem:[%s1236_s0 + $0x120] sm:$0xff]  ;;  %650 = vmatpush.msra.mxu2 %v268_v17  ;;  %651 = vmatpush.msra.mxu3 %v268_v17  ;;  %v267_v35 = vmax.f32 %v234_v23, %v622_v7  ;;  %v132_v37 = vmax.f32 %v99_v25, %v555_v22  ;;  %v31_v44 = vld [vmem:[%s1236_s0 + $0x18] sm:$0xff]  ;;  %v620_v46 = vld [vmem:[%s1236_s0 + $0x3b0] sm:$0xff] }
  0x22   :  { %v554_v39 = vld [vmem:[%s1236_s0 + $0x1a0] sm:$0xff]  ;;  %v233_v40 = vmax.f32 %v200_v29, %v605_v19  ;;  %v199_v41 = vmax.f32 %v166_v30, %v588_v21  ;;  %v521_v45 = vld [vmem:[%s1236_s0 + $0x98] sm:$0xff]  ;;  %v603_v53 = vld [vmem:[%s1236_s0 + $0x328] sm:$0xff] }
  0x23   :  { %v98_v42 = vmax.f32 %v65_v33, %v538_v34  ;;  %v380_v43 = vld [vmem:[%s1239_s3] sm:$0xff]  ;;  %338 = vmatpush.msra.mxu0 %v267_v35  ;;  %652 = vmatpush.msra.mxu1 %v267_v35  ;;  %v165_v47 = vmax.f32 %v132_v37, %v571_v32  ;;  %v64_v49 = vmax.f32 %v31_v44, %v521_v45  ;;  %v537_v50 = vld [vmem:[%s1236_s0 + $0x118] sm:$0xff]  ;;  %v30_v59 = vld [vmem:[%s1236_s0 + $0x10] sm:$0xff] }
  0x24   :  { %v570_v48 = vld [vmem:[%s1236_s0 + $0x220] sm:$0xff]  ;;  %653 = vmatpush.msra.mxu2 %v267_v35  ;;  %654 = vmatpush.msra.mxu3 %v267_v35  ;;  %v266_v51 = vmax.f32 %v233_v40, %v621_v24  ;;  %v232_v52 = vmax.f32 %v199_v41, %v604_v31  ;;  %v553_v56 = vld [vmem:[%s1236_s0 + $0x198] sm:$0xff]  ;;  %v520_v60 = vld [vmem:[%s1236_s0 + $0x90] sm:$0xff] }
  0x25   :  { %v131_v54 = vmax.f32 %v98_v42, %v554_v39  ;;  %v586_v55 = vld [vmem:[%s1236_s0 + $0x2a0] sm:$0xff]  ;;  %328 = vperm.xlu0 %683, %v290_v36   ;;  %v198_v57 = vmax.f32 %v165_v47, %v587_v38  ;;  %390 = vperm.xlu2 %685, %v380_v43   ;;  %v97_v58 = vmax.f32 %v64_v49, %v537_v50  ;;  %v536_v61 = vld [vmem:[%s1236_s0 + $0x110] sm:$0xff]  ;;  %v619_v63 = vld [vmem:[%s1236_s0 + $0x3a8] sm:$0xff] }
  0x26   :  { %339 = vmatpush.msra.mxu0 %v266_v51  ;;  %655 = vmatpush.msra.mxu1 %v266_v51  ;;  %v265_v62 = vmax.f32 %v232_v52, %v620_v46  ;;  %v602_v1 = vld [vmem:[%s1236_s0 + $0x320] sm:$0xff]  ;;  %v569_v2 = vld [vmem:[%s1236_s0 + $0x218] sm:$0xff]  ;;  %v63_v3 = vmax.f32 %v30_v59, %v520_v60  ;;  %v552_v8 = vld [vmem:[%s1236_s0 + $0x190] sm:$0xff] }
  0x27   :  { %v164_v0 = vmax.f32 %v131_v54, %v570_v48  ;;  %656 = vmatpush.msra.mxu2 %v266_v51  ;;  %657 = vmatpush.msra.mxu3 %v266_v51  ;;  %v231_v4 = vmax.f32 %v198_v57, %v603_v53  ;;  %v618_v5 = vld [vmem:[%s1236_s0 + $0x3a0] sm:$0xff]  ;;  %v130_v6 = vmax.f32 %v97_v58, %v553_v56  ;;  %v585_v7 = vld [vmem:[%s1236_s0 + $0x298] sm:$0xff]  ;;  %v29_v11 = vld [vmem:[%s1236_s0 + $0x8] sm:$0xff] }
  0x28   :  { %340 = vmatpush.msra.mxu0 %v265_v62  ;;  %658 = vmatpush.msra.mxu1 %v265_v62  ;;  %v96_v10 = vmax.f32 %v63_v3, %v536_v61  ;;  %v519_v12 = vld [vmem:[%s1236_s0 + $0x88] sm:$0xff]  ;;  %v601_v16 = vld [vmem:[%s1236_s0 + $0x318] sm:$0xff]  ;;  %v568_v17 = vld [vmem:[%s1236_s0 + $0x210] sm:$0xff] }
  0x29   :  { %v197_v9 = vmax.f32 %v164_v0, %v586_v55  ;;  %v535_v13 = vld [vmem:[%s1236_s0 + $0x108] sm:$0xff]  ;;  %659 = vmatpush.msra.mxu2 %v265_v62  ;;  %660 = vmatpush.msra.mxu3 %v265_v62  ;;  %v264_v14 = vmax.f32 %v231_v4, %v619_v63  ;;  %v163_v15 = vmax.f32 %v130_v6, %v569_v2  ;;  %v584_v18 = vld [vmem:[%s1236_s0 + $0x290] sm:$0xff]  ;;  %v387_v22 = vld [vmem:[%s1239_s3 + $0x38] sm:$0xff] }
  0x2a   :  { %v62_v19 = vmax.f32 %v29_v11, %v519_v12  ;;  %v129_v21 = vmax.f32 %v96_v10, %v552_v8  ;;  %v551_v23 = vld [vmem:[%s1236_s0 + $0x188] sm:$0xff]  ;;  %v28_v27 = vld [vmem:[%s1236_s0] sm:$0xff]  ;;  %v617_v31 = vld [vmem:[%s1236_s0 + $0x398] sm:$0xff] }
  0x2b   :  { %v230_v20 = vmax.f32 %v197_v9, %v602_v1  ;;  %v385_v24 = vld [vmem:[%s1239_s3 + $0x28] sm:$0xff]  ;;  %341 = vmatpush.msra.mxu0 %v264_v14  ;;  %661 = vmatpush.msra.mxu1 %v264_v14  ;;  %v196_v25 = vmax.f32 %v163_v15, %v585_v7  ;;  %v518_v28 = vld [vmem:[%s1236_s0 + $0x80] sm:$0xff]  ;;  %v600_v36 = vld [vmem:[%s1236_s0 + $0x310] sm:$0xff] }
  0x2c   :  { %v95_v26 = vmax.f32 %v62_v19, %v535_v13  ;;  %v534_v29 = vld [vmem:[%s1236_s0 + $0x100] sm:$0xff]  ;;  %662 = vmatpush.msra.mxu2 %v264_v14  ;;  %663 = vmatpush.msra.mxu3 %v264_v14  ;;  %v162_v32 = vmax.f32 %v129_v21, %v568_v17  ;;  %v567_v33 = vld [vmem:[%s1236_s0 + $0x208] sm:$0xff]  ;;  %v61_v34 = vmax.f32 %v28_v27, %v518_v28  ;;  %v616_v43 = vld [vmem:[%s1236_s0 + $0x390] sm:$0xff] }
  0x2d   :  { %v263_v30 = vmax.f32 %v230_v20, %v618_v5  ;;  %v229_v35 = vmax.f32 %v196_v25, %v601_v16  ;;  %425 = vperm.xlu0 %683, %v387_v22   ;;  %415 = vperm.xlu1 %684, %v385_v24   ;;  %v550_v38 = vld [vmem:[%s1236_s0 + $0x180] sm:$0xff]  ;;  %v583_v40 = vld [vmem:[%s1236_s0 + $0x288] sm:$0xff] }
  0x2e   :  { %v128_v37 = vmax.f32 %v95_v26, %v551_v23  ;;  %v195_v39 = vmax.f32 %v162_v32, %v584_v18  ;;  %v94_v41 = vmax.f32 %v61_v34, %v534_v29  ;;  %v566_v45 = vld [vmem:[%s1236_s0 + $0x200] sm:$0xff]  ;;  %v381_v46 = vld [vmem:[%s1239_s3 + $0x8] sm:$0xff] }
  0x2f   :  { %342 = vmatpush.msra.mxu0 %v263_v30  ;;  %664 = vmatpush.msra.mxu1 %v263_v30  ;;  %v262_v42 = vmax.f32 %v229_v35, %v617_v31  ;;  %v599_v48 = vld [vmem:[%s1236_s0 + $0x308] sm:$0xff]  ;;  %v582_v51 = vld [vmem:[%s1236_s0 + $0x280] sm:$0xff] }
  0x30   :  { %665 = vmatpush.msra.mxu2 %v263_v30  ;;  %666 = vmatpush.msra.mxu3 %v263_v30  ;;  %v161_v44 = vmax.f32 %v128_v37, %v567_v33  ;;  %v228_v47 = vmax.f32 %v195_v39, %v600_v36  ;;  %v127_v49 = vmax.f32 %v94_v41, %v550_v38 }
  0x31   :  { %395 = vperm.xlu2 %685, %v381_v46   ;;  %343 = vmatpush.msra.mxu0 %v262_v42 }
  0x32   :  { %667 = vmatpush.msra.mxu1 %v262_v42  ;;  %v194_v50 = vmax.f32 %v161_v44, %v583_v40 }
  0x33   :  { %15 = vsyncpa [#allocation5], 0  ;;  %668 = vmatpush.msra.mxu2 %v262_v42  ;;  %669 = vmatpush.msra.mxu3 %v262_v42  ;;  %v261_v52 = vmax.f32 %v228_v47, %v616_v43  ;;  %v615_v53 = vld [vmem:[%s1236_s0 + $0x388] sm:$0xff]  ;;  %v160_v54 = vmax.f32 %v127_v49, %v566_v45  ;;  %v598_v56 = vld [vmem:[%s1236_s0 + $0x300] sm:$0xff]  ;;  %vm436_vm0 = vcmask 48128   ;;  %vm480_vm4 = vcmask 40960  }
  0x34   :  { %v227_v55 = vmax.f32 %v194_v50, %v599_v48  ;;  %v614_v59 = vld [vmem:[%s1236_s0 + $0x380] sm:$0xff]  ;;  %v288_v61 = vld [vmem:[%s1238_s2 + $0x28] sm:$0xff]  ;;  %v277_v0 = vld [vmem:[%s1237_s1 + $0x10] sm:$0xff]  ;;  %s717_s28 = smov 124   ;;  %s718_s29 = smov 126   ;;  %vm496_vm6 = vcmask 8192  }
  0x35   :  { %344 = vmatpush.msra.mxu0 %v261_v52  ;;  %670 = vmatpush.msra.mxu1 %v261_v52  ;;  %v193_v57 = vmax.f32 %v160_v54, %v582_v51  ;;  %v275_v63 = vld [vmem:[%s1237_s1] sm:$0xff]  ;;  %v281_v2 = vld [vmem:[%s1237_s1 + $0x30] sm:$0xff]  ;;  %v276_v4 = vld [vmem:[%s1237_s1 + $0x8] sm:$0xff]  ;;  %s719_s9 = smov [#allocation4]   ;;  %s507_s0 = sshll.u32 %s1243_s7, 4  ;;  %s508_s0 = int_to_ptr.hbm [resolvable:$true] %s507_s0 }
  0x36   :  { %671 = vmatpush.msra.mxu2 %v261_v52  ;;  %672 = vmatpush.msra.mxu3 %v261_v52  ;;  %v260_v58 = vmax.f32 %v227_v55, %v615_v53  ;;  %v279_v1 = vld [vmem:[%s1237_s1 + $0x20] sm:$0xff]  ;;  %v278_v5 = vld [vmem:[%s1237_s1 + $0x18] sm:$0xff]  ;;  %v280_v6 = vld [vmem:[%s1237_s1 + $0x28] sm:$0xff]  ;;  %s505_s10 = sshll.u32 %s719_s9, 4  ;;  %s506_s10 = int_to_ptr.vmem [resolvable:$true] %s505_s10 }
  0x37   :  { %v226_v60 = vmax.f32 %v193_v57, %v598_v56  ;;  %v384_v3 = vld [vmem:[%s1239_s3 + $0x20] sm:$0xff]  ;;  %v282_v7 = vld [vmem:[%s1237_s1 + $0x38] sm:$0xff]  ;;  %v386_v8 = vld [vmem:[%s1239_s3 + $0x30] sm:$0xff] }
  0x38   :  { %345 = vmatpush.msra.mxu0 %v260_v58  ;;  %673 = vmatpush.msra.mxu1 %v260_v58 }
  0x39   :  { %674 = vmatpush.msra.mxu2 %v260_v58  ;;  %675 = vmatpush.msra.mxu3 %v260_v58  ;;  %v259_v62 = vmax.f32 %v226_v60, %v614_v59 }
  0x3a   :  { %318 = vperm.xlu2 %685, %v288_v61  }
  0x3b   :  { %346 = vmatpush.msra.mxu0 %v259_v62  ;;  %676 = vmatpush.msra.mxu1 %v259_v62 }
  0x3c   :  { %677 = vmatpush.msra.mxu2 %v259_v62  ;;  %678 = vmatpush.msra.mxu3 %v259_v62 }
  0x3d   :  { %347 = vmatmul.f32.vlgmr.msra.gmra.mxu0 %v275_v63  ;;  %353 = vmatmul.f32.vlgmr.msra.gmra.mxu1 %v277_v0 }
  0x3e   :  { %359 = vmatmul.f32.vlgmr.msra.gmra.mxu2 %v279_v1  ;;  %365 = vmatmul.f32.vlgmr.msra.gmra.mxu3 %v281_v2 }
  0x42   :  { %410 = vperm.xlu2 %685, %v384_v3  }
  0x45   :  { %350 = vmatmul.f32.gmra.mxu0 %v276_v4  ;;  %356 = vmatmul.f32.gmra.mxu1 %v278_v5 }
  0x46   :  { %362 = vmatmul.f32.gmra.mxu2 %v280_v6  ;;  %368 = vmatmul.f32.gmra.mxu3 %v282_v7 }
  0x4a   :  { %420 = vperm.xlu2 %685, %v386_v8  }
  0x74   :  { %v294_v9 = vpop.permute.xlu0 %293  ;;  %v304_v10 = vpop.permute.xlu1 %303 }
  0x7c   :  { %v299_v12 = vpop.permute.xlu0 %298  ;;  %v309_v13 = vpop.permute.xlu1 %308 }
  0x7f   :  { %v391_v11 = vpop.permute.xlu2 %390 }
  0x85   :  { %v314_v15 = vpop.permute.xlu0 %313 }
  0x87   :  { %v401_v16 = vpop.permute.xlu1 %400 }
  0x8b   :  { %v396_v14 = vpop.permute.xlu2 %395 }
  0x8e   :  { %v406_v20 = vpop.permute.xlu0 %405 }
  0x91   :  { %v324_v28 = vpop.permute.xlu1 %323 }
  0x94   :  { %v319_v17 = vpop.permute.xlu2 %318 }
  0x97   :  { %v329_v37 = vpop.permute.xlu0 %328 }
  0x9c   :  { %v411_v33 = vpop.permute.xlu2 %410 }
  0x9f   :  { %v416_v55 = vpop.permute.xlu1 %415  ;;  %v426_v63 = vpop.permute.xlu0 %425 }
  0xa4   :  { %v421_v58 = vpop.permute.xlu2 %420 }
  0xba   :  { %v348_v18 = vpop.f32.mrf.mxu0  ;;  %v354_v19 = vpop.f32.mrf.mxu1 }
  0xbb   :  { %v349_v21 = vadd.f32 %v348_v18, %v294_v9  ;;  %v355_v22 = vadd.f32 %v354_v19, %v304_v10 }
  0xbd   :  { %v372_v23 = vmax.f32 %v349_v21, 0.0  ;;  %v374_v29 = vmax.f32 %v355_v22, 0.0 }
  0xbf   :  { %v428_v34 = vmul.f32 %v391_v11, %v372_v23  ;;  %v430_v38 = vmul.f32 %v401_v16, %v374_v29 }
  0xc1   :  { %v360_v24 = vpop.f32.mrf.mxu2  ;;  %v366_v25 = vpop.f32.mrf.mxu3  ;;  %v437_v42 = vsel %vm436_vm0, %v428_v34, 0.0  ;;  %v440_v50 = vsel %vm436_vm0, %v430_v38, 0.0 }
  0xc2   :  { %v351_v26 = vpop.f32.mrf.mxu0  ;;  %v357_v27 = vpop.f32.mrf.mxu1  ;;  %v361_v30 = vadd.f32 %v360_v24, %v314_v15  ;;  %v367_v40 = vadd.f32 %v366_v25, %v324_v28 }
  0xc3   :  { %v352_v31 = vadd.f32 %v351_v26, %v299_v12  ;;  %v358_v32 = vadd.f32 %v357_v27, %v309_v13  ;;  %v459_v13 = vstv %s1240_s4 }
  0xc4   :  { %v376_v39 = vmax.f32 %v361_v30, 0.0  ;;  %v378_v52 = vmax.f32 %v367_v40, 0.0 }
  0xc5   :  { %v373_v35 = vmax.f32 %v352_v31, 0.0  ;;  %v375_v36 = vmax.f32 %v358_v32, 0.0 }
  0xc6   :  { %v432_v51 = vmul.f32 %v411_v33, %v376_v39  ;;  %v434_v62 = vmul.f32 %v421_v58, %v378_v52  ;;  %v493_v33 = vstv %s1241_s5 }
  0xc7   :  { %v429_v41 = vmul.f32 %v396_v14, %v373_v35  ;;  %v431_v44 = vmul.f32 %v406_v20, %v375_v36 }
  0xc8   :  { %v444_v61 = vsel %vm436_vm0, %v432_v51, 0.0  ;;  %v448_v4 = vsel %vm436_vm0, %v434_v62, 0.0 }
  0xc9   :  { %v438_v43 = vsel %vm436_vm0, %v429_v41, 0.0  ;;  %v363_v45 = vpop.f32.mrf.mxu2  ;;  %v369_v46 = vpop.f32.mrf.mxu3  ;;  %v442_v56 = vsel %vm436_vm0, %v431_v44, 0.0 }
  0xca   :  { %v439_v47 = vadd.f32 %v438_v43, %v437_v42  ;;  %v364_v48 = vadd.f32 %v363_v45, %v319_v17  ;;  %v370_v49 = vadd.f32 %v369_v46, %v329_v37 }
  0xcc   :  { %v441_v53 = vadd.f32 %v440_v50, %v439_v47  ;;  %v377_v54 = vmax.f32 %v364_v48, 0.0  ;;  %v379_v57 = vmax.f32 %v370_v49, 0.0 }
  0xce   :  { %v443_v59 = vadd.f32 %v442_v56, %v441_v53  ;;  %v433_v60 = vmul.f32 %v416_v55, %v377_v54  ;;  %v435_v2 = vmul.f32 %v426_v63, %v379_v57 }
  0xd0   :  { %v445_v0 = vadd.f32 %v444_v61, %v443_v59  ;;  %v446_v1 = vsel %vm436_vm0, %v433_v60, 0.0  ;;  %v450_v6 = vsel %vm436_vm0, %v435_v2, 0.0 }
  0xd2   :  { %v447_v3 = vadd.f32 %v446_v1, %v445_v0 }
  0xd4   :  { %v449_v5 = vadd.f32 %v448_v4, %v447_v3 }
  0xd6   :  { %v451_v7 = vadd.f32 %v450_v6, %v449_v5 }
  0xd8   :  { %v452_v8 = vrot.slane %v451_v7, 4 }
  0xda   :  { %v453_v9 = vadd.f32 %v452_v8, %v451_v7 }
  0xdc   :  { %v454_v10 = vrot.slane %v453_v9, 2 }
  0xde   :  { %v455_v11 = vadd.f32 %v454_v10, %v453_v9 }
  0xe0   :  { %v456_v12 = vrot.slane %v455_v11, 1 }
  0xe2   :  { %v457_v14 = vadd.f32 %v456_v12, %v455_v11 }
  0xe4   :  { %v460_v15 = vadd.f32 %v459_v13, %v457_v14 }
  0xe6   :  { %v630_v16 = vmul.f32 -1.442695, %v460_v15 }
  0xe8   :  { %686 = vpow2.f32 %v630_v16 }
  0xee   :  { %v687_v17 = vpop.eup %686 }
  0xef   :  { %v464_v18 = vadd.f32 1.0, %v687_v17 }
  0xf1   :  { %688 = vrcp.f32 %v464_v18  ;;  %v476_v22 = vand.u32 2147483648, %v464_v18  ;;  %v474_v24 = vand.u32 2147483647, %v464_v18  ;;  %vm470_vm2 = vweird.f32 %v464_v18 }
  0xf3   :  { %v477_v26 = vor.u32 1.1754944e-38, %v476_v22  ;;  %vm475_vm5 = vcmp.eq.f32.partialorder %v474_v24, 8.507059e+37 }
  0xf7   :  { %v689_v19 = vpop.eup %688 }
  0xf8   :  { %v466_v20 = vmul.f32 %v689_v19, %v464_v18  ;;  %vm471_vm1 = vweird.f32 %v689_v19 }
  0xf9   :  { %vm472_vm3 = vmor %vm470_vm2, %vm471_vm1 }
  0xfa   :  { %v467_v21 = vsub.f32 1.0, %v466_v20 }
  0xfc   :  { %v468_v23 = vmul.f32 %v689_v19, %v467_v21 }
  0xfe   :  { %v469_v25 = vadd.f32 %v689_v19, %v468_v23 }
 0x100   :  { %v473_v27 = vsel %vm472_vm3, %v689_v19, %v469_v25 }
 0x101   :  { %v478_v28 = vsel %vm475_vm5, %v477_v26, %v473_v27 }
 0x102   :  { %v482_v29 = vsub.f32 1.0, %v478_v28  ;;  %481 = vst.msk [vmem:[%s1242_s6] sm:$0x1] %vm480_vm4, %v478_v28 }
 0x104   :  { %488 = vrot.lane.b32.xlu2 %v482_v29, %s717_s28  ;;  %484 = vrot.lane.b32.xlu1 %v482_v29, %s718_s29 }
 0x15e   :  { %v489_v32 = vpop.permute.xlu2 %488 }
 0x176   :  { %v485_v30 = vpop.permute.xlu1 %484 }
 0x177   :  { %v487_v31 = vmul.f32 %v485_v30, %v482_v29 }
 0x179   :  { %v491_v34 = vmul.f32 %v489_v32, %v487_v31 }
 0x17b   :  { %v494_v35 = vmul.f32 %v493_v33, %v491_v34 }
 0x17d   :  { %v495_v36 = vsub.f32 1.0, %v494_v35 }
 0x17f   :  { %497 = vst.msk [vmem:[#allocation4] sm:$0x1] %vm496_vm6, %v495_v36 }
 0x180   :  { %510 = dma.vmem_to_hbm [thread:$0]  %s506_s10, 16, %s508_s0, [#allocation5]  }
 0x181   :  { %714 = dma.done.wait [#allocation5], 16  }
 0x182   :  { %715 = vsyncadd [#allocation5], 4294967280 }
 0x183   :  { %517 = vsyncpa [#allocation5], 1 }

</bundles_post_ra>
